<compile_context>
chip_gen: v5e
topology: v5e:2x2
jax: 0.10.0
libtpu: 0.0.40
codegen_flags: <defaults>
</compile_context>

<pallas_src>
import functools
import math

import jax
import jax.numpy as jnp
from jax.experimental import pallas as pl
from jax.experimental.pallas import tpu as pltpu

_LANE = 128          # feature dims padded to multiples of the 128-lane vreg width
_BF16_SUBLANE = 16   # bf16 packs 16 sublanes per vreg -> batch tile multiple


def _round_up(x: int, m: int) -> int:
    return ((x + m - 1) // m) * m


def _device_kind() -> str:
    try:
        return jax.devices()[0].device_kind.lower()
    except Exception:
        return ""


def _is_v7x() -> bool:
    return "v7" in _device_kind()


def _fused_mlp_kernel(*refs, num_linear: int):
    """Whole MLP on one (tm, d0) activation tile; every layer fused in-kernel.

    refs layout:
      refs[0]             : x    (tm, d0)        bf16
      refs[1 : 1+L]       : W_l  (d_l, d_{l+1})  bf16 (pre-transposed: y = x @ W)
      refs[1+L : 1+2L]    : b_l  (1, d_{l+1})    f32
      refs[1+2L]          : out  (tm, d_L)       f32
    """
    x_ref = refs[0]
    w_refs = refs[1:1 + num_linear]
    b_refs = refs[1 + num_linear:1 + 2 * num_linear]
    o_ref = refs[1 + 2 * num_linear]

    h = x_ref[...]                                   # bf16 activations stay on-chip
    y = None
    for l in range(num_linear):                      # statically unrolled layer loop
        y = jnp.dot(h, w_refs[l][...], preferred_element_type=jnp.float32)
        y = y + b_refs[l][...]                       # (1, d) broadcasts over rows (VPU)
        if l < num_linear - 1:
            h = jnp.maximum(y, 0.0).astype(jnp.bfloat16)   # fused ReLU, back to bf16
    o_ref[...] = y.astype(o_ref.dtype)


def prepare_dense_nn_params(params):
    """One-time parameter prep (hoisted out of the forward pass).

    params: list of (W[in, out] f32, b[out] f32) in forward order
            (weights pre-transposed vs. torch so the kernel does x @ W + b).
    Each layer is zero-padded independently to 128-lane multiples.
    """
    assert len(params) >= 1, "DenseNN needs at least one Linear layer"
    dims = [params[0][0].shape[0]] + [w.shape[1] for (w, _) in params]
    pdims = [_round_up(d, _LANE) for d in dims]
    # NOTE: v6e/v7x MXUs are 256x256; if you control n_hidden, prefer 256-multiples.
    w_pad, b_pad = [], []
    for l, (w, b) in enumerate(params):
        k, n = w.shape
        assert k == dims[l] and n == dims[l + 1]
        wp = jnp.zeros((pdims[l], pdims[l + 1]), jnp.bfloat16)
        wp = wp.at[:k, :n].set(w.astype(jnp.bfloat16))
        bp = jnp.zeros((1, pdims[l + 1]), jnp.float32)
        bp = bp.at[0, :n].set(b.astype(jnp.float32))
        w_pad.append(wp)
        b_pad.append(bp)
    return {
        "w": tuple(w_pad),
        "b": tuple(b_pad),
        "dims": tuple(dims),
        "pdims": tuple(pdims),
    }


def dense_nn_forward(x: jax.Array, prepped) -> jax.Array:
    """DenseNN forward: x[batch, n_input] f32 -> [batch, n_output] f32."""
    M, n_in = x.shape
    dims, pdims = prepped["dims"], prepped["pdims"]
    w_pad, b_pad = prepped["w"], prepped["b"]
    L = len(w_pad)
    assert n_in == dims[0], f"expected {dims[0]} input features, got {n_in}"
    n_out = dims[-1]
    d_in, d_out = pdims[0], pdims[-1]

    # Batch tile: bf16-sublane aligned (16); generation-aware cap.
    tm_cap = 256 if _is_v7x() else 512
    tm = min(_round_up(max(M, 1), _BF16_SUBLANE), tm_cap)
    M_pad = _round_up(M, tm)

    # Pad input only to round_up(n_input, 128) lanes (zero padding is exact:
    # padded lanes/rows stay zero through matmul, bias add and ReLU).
    x_p = jnp.zeros((M_pad, d_in), jnp.bfloat16).at[:M, :n_in].set(
        x.astype(jnp.bfloat16))

    # VMEM budget: single-buffered weights + biases, double-buffered x / out tiles,
    # plus headroom for the widest f32 intermediate activation.
    weight_bytes = sum(pdims[l] * pdims[l + 1] for l in range(L)) * 2
    bias_bytes = sum(pdims[1:]) * 4
    act_bytes = 2 * tm * d_in * 2 + 2 * tm * d_out * 4
    interm_bytes = 2 * tm * max(pdims) * 4
    needed = weight_bytes + bias_bytes + act_bytes + interm_bytes
    vmem_ceiling = (48 << 20) if _is_v7x() else (100 << 20)
    if needed > vmem_ceiling:
        # TODO(synk): K/N-tile the layer matmuls (emit_pipeline over K with an f32
        # VMEM accumulator) once resident weights exceed the VMEM budget.
        raise ValueError(
            f"Weight-resident MLP needs ~{needed >> 20} MiB VMEM, above the "
            f"{vmem_ceiling >> 20} MiB budget for this chip; K/N tiling required.")
    vmem_limit = int(min(vmem_ceiling, max(32 << 20, needed + (8 << 20))))

    kernel = functools.partial(_fused_mlp_kernel, num_linear=L)

    def _run(single_buffer_params: bool):
        pm = pl.Buffered(1) if single_buffer_params else None
        in_specs = [pl.BlockSpec((tm, d_in), lambda i: (i, 0))]        # x batch tile
        for l in range(L):                                             # weights (grid-invariant)
            in_specs.append(pl.BlockSpec((pdims[l], pdims[l + 1]),
                                         lambda i: (0, 0), pipeline_mode=pm))
        for l in range(L):                                             # biases (grid-invariant)
            in_specs.append(pl.BlockSpec((1, pdims[l + 1]),
                                         lambda i: (0, 0), pipeline_mode=pm))
        return pl.pallas_call(
            kernel,
            out_shape=jax.ShapeDtypeStruct((M_pad, d_out), jnp.float32),
            grid=(M_pad // tm,),
            in_specs=in_specs,
            out_specs=pl.BlockSpec((tm, d_out), lambda i: (i, 0)),
            compiler_params=pltpu.CompilerParams(
                dimension_semantics=("parallel",),   # batch axis -> both TCs on v7x
                vmem_limit_bytes=vmem_limit,
            ),
        )(x_p, *w_pad, *b_pad)

    try:
        out_p = _run(single_buffer_params=True)
    except Exception:
        # Safety net: fall back to default double-buffering if Buffered(1) is rejected.
        out_p = _run(single_buffer_params=False)

    return out_p[:M, :n_out]


def init_dense_nn_params(key, n_input: int, n_output: int,
                         n_hidden: int = 128, n_layers: int = 1):
    """Deterministic init mimicking torch.nn.Linear (uniform +/- 1/sqrt(fan_in)).

    Returns list of (W[in, out], b[out]) in forward order.
    """
    dims = [n_input] + [n_hidden] * n_layers + [n_output]
    params = []
    for i in range(len(dims) - 1):
        fan_in, fan_out = dims[i], dims[i + 1]
        key, kw, kb = jax.random.split(key, 3)
        bound = 1.0 / math.sqrt(fan_in)
        w = jax.random.uniform(kw, (fan_in, fan_out), jnp.float32, -bound, bound)
        b = jax.random.uniform(kb, (fan_out,), jnp.float32, -bound, bound)
        params.append((w, b))
    return params


if __name__ == "__main__":
    # Small shapes consistent with the module: n_input=16, n_hidden=32,
    # n_output=8, n_layers=2 (=> 3 Linear layers), batch=8.
    key = jax.random.PRNGKey(0)
    k_params, k_x = jax.random.split(key)

    n_input, n_output, n_hidden, n_layers = 16, 8, 32, 2
    batch = 8

    params = init_dense_nn_params(k_params, n_input, n_output, n_hidden, n_layers)
    prepped = prepare_dense_nn_params(params)   # one-time padded-param prep
    x = jax.random.normal(k_x, (batch, n_input), jnp.float32)

    out = jax.block_until_ready(dense_nn_forward(x, prepped))

    # Reference with the same bf16-input / f32-accumulate numerics.
    h = x
    for i, (w, b) in enumerate(params):
        y = jnp.dot(h.astype(jnp.bfloat16), w.astype(jnp.bfloat16),
                    preferred_element_type=jnp.float32) + b
        h = jnp.maximum(y, 0.0).astype(jnp.bfloat16) if i < len(params) - 1 else y
    ref = h

    assert out.shape == (batch, n_output)
    assert jnp.allclose(out, ref, atol=1e-3, rtol=1e-3)

    print("KERNEL_OK")
</pallas_src>

<mosaic_0001>
module attributes {stable_mosaic.version = 11 : i64} {
  func.func @_fused_mlp_kernel(%arg0: i32, %arg1: memref<16x128xbf16, #tpu.memory_space<vmem>>, %arg2: memref<128x128xbf16, #tpu.memory_space<vmem>>, %arg3: memref<128x128xbf16, #tpu.memory_space<vmem>>, %arg4: memref<128x128xbf16, #tpu.memory_space<vmem>>, %arg5: memref<1x128xf32, #tpu.memory_space<vmem>>, %arg6: memref<1x128xf32, #tpu.memory_space<vmem>>, %arg7: memref<1x128xf32, #tpu.memory_space<vmem>>, %arg8: memref<16x128xf32, #tpu.memory_space<vmem>>) attributes {dimension_semantics = [#tpu.dimension_semantics<parallel>], iteration_bounds = array<i64: 1>, scalar_prefetch = 0 : i64, scratch_operands = 0 : i64, tpu.core_type = #tpu.core_type<tc>, window_params = [{transform_indices = @transform_0, window_bounds = array<i64: 16, 128>}, {pipeline_mode = #tpu.pipeline_mode<synchronous>, transform_indices = @transform_1, window_bounds = array<i64: 128, 128>}, {pipeline_mode = #tpu.pipeline_mode<synchronous>, transform_indices = @transform_2, window_bounds = array<i64: 128, 128>}, {pipeline_mode = #tpu.pipeline_mode<synchronous>, transform_indices = @transform_3, window_bounds = array<i64: 128, 128>}, {pipeline_mode = #tpu.pipeline_mode<synchronous>, transform_indices = @transform_4, window_bounds = array<i64: 1, 128>}, {pipeline_mode = #tpu.pipeline_mode<synchronous>, transform_indices = @transform_5, window_bounds = array<i64: 1, 128>}, {pipeline_mode = #tpu.pipeline_mode<synchronous>, transform_indices = @transform_6, window_bounds = array<i64: 1, 128>}, {transform_indices = @transform_7, window_bounds = array<i64: 16, 128>}]} {
    %c0 = arith.constant 0 : index
    %c0_0 = arith.constant 0 : index
    %0 = vector.load %arg1[%c0, %c0_0] : memref<16x128xbf16, #tpu.memory_space<vmem>>, vector<16x128xbf16>
    %c0_1 = arith.constant 0 : index
    %c0_2 = arith.constant 0 : index
    %1 = vector.load %arg2[%c0_1, %c0_2] : memref<128x128xbf16, #tpu.memory_space<vmem>>, vector<128x128xbf16>
    %cst = arith.constant dense<0.000000e+00> : vector<16x128xf32>
    %2 = tpu.matmul %0, %1, %cst {dimension_numbers = #tpu.dot_dimension_numbers<[1], [0], [0], [1], [0, 0, 1, 1], [], []>} : vector<16x128xbf16>, vector<128x128xbf16>, vector<16x128xf32> -> vector<16x128xf32>
    %c0_3 = arith.constant 0 : index
    %c0_4 = arith.constant 0 : index
    %3 = vector.load %arg5[%c0_3, %c0_4] : memref<1x128xf32, #tpu.memory_space<vmem>>, vector<1x128xf32>
    %4 = vector.broadcast %3 : vector<1x128xf32> to vector<16x128xf32>
    %5 = arith.addf %2, %4 : vector<16x128xf32>
    %cst_5 = arith.constant 0.000000e+00 : f32
    %6 = vector.broadcast %cst_5 : f32 to vector<16x128xf32>
    %7 = arith.maximumf %5, %6 : vector<16x128xf32>
    %8 = arith.truncf %7 : vector<16x128xf32> to vector<16x128xbf16>
    %c0_6 = arith.constant 0 : index
    %c0_7 = arith.constant 0 : index
    %9 = vector.load %arg3[%c0_6, %c0_7] : memref<128x128xbf16, #tpu.memory_space<vmem>>, vector<128x128xbf16>
    %cst_8 = arith.constant dense<0.000000e+00> : vector<16x128xf32>
    %10 = tpu.matmul %8, %9, %cst_8 {dimension_numbers = #tpu.dot_dimension_numbers<[1], [0], [0], [1], [0, 0, 1, 1], [], []>} : vector<16x128xbf16>, vector<128x128xbf16>, vector<16x128xf32> -> vector<16x128xf32>
    %c0_9 = arith.constant 0 : index
    %c0_10 = arith.constant 0 : index
    %11 = vector.load %arg6[%c0_9, %c0_10] : memref<1x128xf32, #tpu.memory_space<vmem>>, vector<1x128xf32>
    %12 = vector.broadcast %11 : vector<1x128xf32> to vector<16x128xf32>
    %13 = arith.addf %10, %12 : vector<16x128xf32>
    %cst_11 = arith.constant 0.000000e+00 : f32
    %14 = vector.broadcast %cst_11 : f32 to vector<16x128xf32>
    %15 = arith.maximumf %13, %14 : vector<16x128xf32>
    %16 = arith.truncf %15 : vector<16x128xf32> to vector<16x128xbf16>
    %c0_12 = arith.constant 0 : index
    %c0_13 = arith.constant 0 : index
    %17 = vector.load %arg4[%c0_12, %c0_13] : memref<128x128xbf16, #tpu.memory_space<vmem>>, vector<128x128xbf16>
    %cst_14 = arith.constant dense<0.000000e+00> : vector<16x128xf32>
    %18 = tpu.matmul %16, %17, %cst_14 {dimension_numbers = #tpu.dot_dimension_numbers<[1], [0], [0], [1], [0, 0, 1, 1], [], []>} : vector<16x128xbf16>, vector<128x128xbf16>, vector<16x128xf32> -> vector<16x128xf32>
    %c0_15 = arith.constant 0 : index
    %c0_16 = arith.constant 0 : index
    %19 = vector.load %arg7[%c0_15, %c0_16] : memref<1x128xf32, #tpu.memory_space<vmem>>, vector<1x128xf32>
    %20 = vector.broadcast %19 : vector<1x128xf32> to vector<16x128xf32>
    %21 = arith.addf %18, %20 : vector<16x128xf32>
    %c0_17 = arith.constant 0 : index
    %c0_18 = arith.constant 0 : index
    %22 = vector.load %arg8[%c0_17, %c0_18] : memref<16x128xf32, #tpu.memory_space<vmem>>, vector<16x128xf32>
    tpu.vector_store %arg8[%c0_17, %c0_18], %21 {strides = array<i32>} : memref<16x128xf32, #tpu.memory_space<vmem>>, vector<16x128xf32>,
    return
  }
  func.func @transform_0(%arg0: i32) -> (i32, i32) {
    %c0_i32 = arith.constant 0 : i32
    %c0_i32_0 = arith.constant 0 : i32
    return %arg0, %c0_i32 : i32, i32
  }
  func.func @transform_1(%arg0: i32) -> (i32, i32) {
    %c0_i32 = arith.constant 0 : i32
    %c0_i32_0 = arith.constant 0 : i32
    %c0_i32_1 = arith.constant 0 : i32
    return %c0_i32, %c0_i32_0 : i32, i32
  }
  func.func @transform_2(%arg0: i32) -> (i32, i32) {
    %c0_i32 = arith.constant 0 : i32
    %c0_i32_0 = arith.constant 0 : i32
    %c0_i32_1 = arith.constant 0 : i32
    return %c0_i32, %c0_i32_0 : i32, i32
  }
  func.func @transform_3(%arg0: i32) -> (i32, i32) {
    %c0_i32 = arith.constant 0 : i32
    %c0_i32_0 = arith.constant 0 : i32
    %c0_i32_1 = arith.constant 0 : i32
    return %c0_i32, %c0_i32_0 : i32, i32
  }
  func.func @transform_4(%arg0: i32) -> (i32, i32) {
    %c0_i32 = arith.constant 0 : i32
    %c0_i32_0 = arith.constant 0 : i32
    %c0_i32_1 = arith.constant 0 : i32
    return %c0_i32, %c0_i32_0 : i32, i32
  }
  func.func @transform_5(%arg0: i32) -> (i32, i32) {
    %c0_i32 = arith.constant 0 : i32
    %c0_i32_0 = arith.constant 0 : i32
    %c0_i32_1 = arith.constant 0 : i32
    return %c0_i32, %c0_i32_0 : i32, i32
  }
  func.func @transform_6(%arg0: i32) -> (i32, i32) {
    %c0_i32 = arith.constant 0 : i32
    %c0_i32_0 = arith.constant 0 : i32
    %c0_i32_1 = arith.constant 0 : i32
    return %c0_i32, %c0_i32_0 : i32, i32
  }
  func.func @transform_7(%arg0: i32) -> (i32, i32) {
    %c0_i32 = arith.constant 0 : i32
    %c0_i32_0 = arith.constant 0 : i32
    return %arg0, %c0_i32 : i32, i32
  }
}

module attributes {stable_mosaic.version = 11 : i64} {
  func.func @_fused_mlp_kernel(%arg0: i32, %arg1: memref<16x128xbf16, #tpu.memory_space<vmem>>, %arg2: memref<128x128xbf16, #tpu.memory_space<vmem>>, %arg3: memref<128x128xbf16, #tpu.memory_space<vmem>>, %arg4: memref<128x128xbf16, #tpu.memory_space<vmem>>, %arg5: memref<1x128xf32, #tpu.memory_space<vmem>>, %arg6: memref<1x128xf32, #tpu.memory_space<vmem>>, %arg7: memref<1x128xf32, #tpu.memory_space<vmem>>, %arg8: memref<16x128xf32, #tpu.memory_space<vmem>>) attributes {dimension_semantics = [#tpu.dimension_semantics<parallel>], iteration_bounds = array<i64: 1>, scalar_prefetch = 0 : i64, scratch_operands = 0 : i64, tpu.core_type = #tpu.core_type<tc>, window_params = [{transform_indices = @transform_0, window_bounds = array<i64: 16, 128>}, {pipeline_mode = #tpu.pipeline_mode<synchronous>, transform_indices = @transform_1, window_bounds = array<i64: 128, 128>}, {pipeline_mode = #tpu.pipeline_mode<synchronous>, transform_indices = @transform_2, window_bounds = array<i64: 128, 128>}, {pipeline_mode = #tpu.pipeline_mode<synchronous>, transform_indices = @transform_3, window_bounds = array<i64: 128, 128>}, {pipeline_mode = #tpu.pipeline_mode<synchronous>, transform_indices = @transform_4, window_bounds = array<i64: 1, 128>}, {pipeline_mode = #tpu.pipeline_mode<synchronous>, transform_indices = @transform_5, window_bounds = array<i64: 1, 128>}, {pipeline_mode = #tpu.pipeline_mode<synchronous>, transform_indices = @transform_6, window_bounds = array<i64: 1, 128>}, {transform_indices = @transform_7, window_bounds = array<i64: 16, 128>}]} {
    %c0 = arith.constant 0 : index
    %c0_0 = arith.constant 0 : index
    %0 = vector.load %arg1[%c0, %c0_0] : memref<16x128xbf16, #tpu.memory_space<vmem>>, vector<16x128xbf16>
    %c0_1 = arith.constant 0 : index
    %c0_2 = arith.constant 0 : index
    %1 = vector.load %arg2[%c0_1, %c0_2] : memref<128x128xbf16, #tpu.memory_space<vmem>>, vector<128x128xbf16>
    %cst = arith.constant dense<0.000000e+00> : vector<16x128xf32>
    %2 = tpu.matmul %0, %1, %cst {dimension_numbers = #tpu.dot_dimension_numbers<[1], [0], [0], [1], [0, 0, 1, 1], [], []>} : vector<16x128xbf16>, vector<128x128xbf16>, vector<16x128xf32> -> vector<16x128xf32>
    %c0_3 = arith.constant 0 : index
    %c0_4 = arith.constant 0 : index
    %3 = vector.load %arg5[%c0_3, %c0_4] : memref<1x128xf32, #tpu.memory_space<vmem>>, vector<1x128xf32>
    %4 = vector.broadcast %3 : vector<1x128xf32> to vector<16x128xf32>
    %5 = arith.addf %2, %4 : vector<16x128xf32>
    %cst_5 = arith.constant 0.000000e+00 : f32
    %6 = vector.broadcast %cst_5 : f32 to vector<16x128xf32>
    %7 = arith.maximumf %5, %6 : vector<16x128xf32>
    %8 = arith.truncf %7 : vector<16x128xf32> to vector<16x128xbf16>
    %c0_6 = arith.constant 0 : index
    %c0_7 = arith.constant 0 : index
    %9 = vector.load %arg3[%c0_6, %c0_7] : memref<128x128xbf16, #tpu.memory_space<vmem>>, vector<128x128xbf16>
    %cst_8 = arith.constant dense<0.000000e+00> : vector<16x128xf32>
    %10 = tpu.matmul %8, %9, %cst_8 {dimension_numbers = #tpu.dot_dimension_numbers<[1], [0], [0], [1], [0, 0, 1, 1], [], []>} : vector<16x128xbf16>, vector<128x128xbf16>, vector<16x128xf32> -> vector<16x128xf32>
    %c0_9 = arith.constant 0 : index
    %c0_10 = arith.constant 0 : index
    %11 = vector.load %arg6[%c0_9, %c0_10] : memref<1x128xf32, #tpu.memory_space<vmem>>, vector<1x128xf32>
    %12 = vector.broadcast %11 : vector<1x128xf32> to vector<16x128xf32>
    %13 = arith.addf %10, %12 : vector<16x128xf32>
    %cst_11 = arith.constant 0.000000e+00 : f32
    %14 = vector.broadcast %cst_11 : f32 to vector<16x128xf32>
    %15 = arith.maximumf %13, %14 : vector<16x128xf32>
    %16 = arith.truncf %15 : vector<16x128xf32> to vector<16x128xbf16>
    %c0_12 = arith.constant 0 : index
    %c0_13 = arith.constant 0 : index
    %17 = vector.load %arg4[%c0_12, %c0_13] : memref<128x128xbf16, #tpu.memory_space<vmem>>, vector<128x128xbf16>
    %cst_14 = arith.constant dense<0.000000e+00> : vector<16x128xf32>
    %18 = tpu.matmul %16, %17, %cst_14 {dimension_numbers = #tpu.dot_dimension_numbers<[1], [0], [0], [1], [0, 0, 1, 1], [], []>} : vector<16x128xbf16>, vector<128x128xbf16>, vector<16x128xf32> -> vector<16x128xf32>
    %c0_15 = arith.constant 0 : index
    %c0_16 = arith.constant 0 : index
    %19 = vector.load %arg7[%c0_15, %c0_16] : memref<1x128xf32, #tpu.memory_space<vmem>>, vector<1x128xf32>
    %20 = vector.broadcast %19 : vector<1x128xf32> to vector<16x128xf32>
    %21 = arith.addf %18, %20 : vector<16x128xf32>
    %c0_17 = arith.constant 0 : index
    %c0_18 = arith.constant 0 : index
    %22 = vector.load %arg8[%c0_17, %c0_18] : memref<16x128xf32, #tpu.memory_space<vmem>>, vector<16x128xf32>
    tpu.vector_store %arg8[%c0_17, %c0_18], %21 {strides = array<i32>} : memref<16x128xf32, #tpu.memory_space<vmem>>, vector<16x128xf32>,
    return
  }
  func.func @transform_0(%arg0: i32) -> (i32, i32) {
    %c0_i32 = arith.constant 0 : i32
    %c0_i32_0 = arith.constant 0 : i32
    return %arg0, %c0_i32 : i32, i32
  }
  func.func @transform_1(%arg0: i32) -> (i32, i32) {
    %c0_i32 = arith.constant 0 : i32
    %c0_i32_0 = arith.constant 0 : i32
    %c0_i32_1 = arith.constant 0 : i32
    return %c0_i32, %c0_i32_0 : i32, i32
  }
  func.func @transform_2(%arg0: i32) -> (i32, i32) {
    %c0_i32 = arith.constant 0 : i32
    %c0_i32_0 = arith.constant 0 : i32
    %c0_i32_1 = arith.constant 0 : i32
    return %c0_i32, %c0_i32_0 : i32, i32
  }
  func.func @transform_3(%arg0: i32) -> (i32, i32) {
    %c0_i32 = arith.constant 0 : i32
    %c0_i32_0 = arith.constant 0 : i32
    %c0_i32_1 = arith.constant 0 : i32
    return %c0_i32, %c0_i32_0 : i32, i32
  }
  func.func @transform_4(%arg0: i32) -> (i32, i32) {
    %c0_i32 = arith.constant 0 : i32
    %c0_i32_0 = arith.constant 0 : i32
    %c0_i32_1 = arith.constant 0 : i32
    return %c0_i32, %c0_i32_0 : i32, i32
  }
  func.func @transform_5(%arg0: i32) -> (i32, i32) {
    %c0_i32 = arith.constant 0 : i32
    %c0_i32_0 = arith.constant 0 : i32
    %c0_i32_1 = arith.constant 0 : i32
    return %c0_i32, %c0_i32_0 : i32, i32
  }
  func.func @transform_6(%arg0: i32) -> (i32, i32) {
    %c0_i32 = arith.constant 0 : i32
    %c0_i32_0 = arith.constant 0 : i32
    %c0_i32_1 = arith.constant 0 : i32
    return %c0_i32, %c0_i32_0 : i32, i32
  }
  func.func @transform_7(%arg0: i32) -> (i32, i32) {
    %c0_i32 = arith.constant 0 : i32
    %c0_i32_0 = arith.constant 0 : i32
    return %arg0, %c0_i32 : i32, i32
  }
}

</mosaic_0001>

<bundles_post_ra>
// kernel: tpu_custom_call.1
= control target key start
LH: loop header
LB: loop body
LE: loop exit
PB: predicated region body
PF: predicated region fallthrough
CT: control target
= control target key end

     0   :  { %12 = vsyncpa [#allocation3], 0  ;;  %s711_s0 = inlined_call_operand.hbm [shape: bf16[16,128], index: 0, kind: input, shape index: {}]   ;;  %s712_s1 = inlined_call_operand.hbm [shape: bf16[128,128], index: 1, kind: input, shape index: {}]   ;;  %s713_s2 = inlined_call_operand.hbm [shape: bf16[128,128], index: 2, kind: input, shape index: {}]   ;;  %s714_s3 = inlined_call_operand.hbm [shape: bf16[128,128], index: 3, kind: input, shape index: {}]   ;;  %s715_s4 = inlined_call_operand.vmem [shape: f32[1,128], index: 4, kind: input, shape index: {}]   ;;  %s716_s5 = inlined_call_operand.vmem [shape: f32[1,128], index: 5, kind: input, shape index: {}]   ;;  %s717_s6 = inlined_call_operand.vmem [shape: f32[1,128], index: 6, kind: input, shape index: {}]   ;;  %s718_s7 = inlined_call_operand.hbm [shape: f32[16,128], index: 7, kind: output, shape index: {}]  }
   0x1   :  { %13 = vsyncpa [#allocation6], 0 }
   0x2   :  { %14 = vsyncpa [#allocation9], 0 }
   0x3   :  { %15 = vsyncpa [#allocation4], 0  ;;  %s33_s26 = sshll.u32 %s712_s1, 4  ;;  %s638_s27 = smov [#allocation5]   ;;  %s34_s26 = int_to_ptr.hbm [resolvable:$true] %s33_s26 }
   0x4   :  { %s35_s28 = sshll.u32 %s638_s27, 4  ;;  %s20_s8 = sshll.u32 %s711_s0, 4  ;;  %s36_s28 = int_to_ptr.vmem [resolvable:$true] %s35_s28  ;;  %s21_s8 = int_to_ptr.hbm [resolvable:$true] %s20_s8 }
   0x5   :  { %s639_s9 = smov 64   ;;  %s640_s10 = smov 4  }
   0x6   :  { %41 = dma.hbm_to_vmem [thread:$0]  %s34_s26, 1024, %s36_s28, [#allocation6], %s639_s9, %s639_s9, %s640_s10  }
   0x7   :  { %s641_s11 = smov [#allocation2]   ;;  %s46_s15 = sshll.u32 %s713_s2, 4  ;;  %s47_s15 = int_to_ptr.hbm [resolvable:$true] %s46_s15 }
   0x8   :  { %s22_s12 = sshll.u32 %s641_s11, 4  ;;  %s59_s17 = sshll.u32 %s714_s3, 4  ;;  %s23_s12 = int_to_ptr.vmem [resolvable:$true] %s22_s12  ;;  %s60_s17 = int_to_ptr.hbm [resolvable:$true] %s59_s17 }
   0x9   :  { %28 = dma.hbm_to_vmem [thread:$0]  %s21_s8, 128, %s23_s12, [#allocation3], %s639_s9, %s639_s9, %s640_s10  }
   0xa   :  { %s642_s18 = smov [#allocation7]   ;;  %s643_s0 = smov [#allocation8]  }
   0xb   :  { %s48_s19 = sshll.u32 %s642_s18, 4  ;;  %s61_s20 = sshll.u32 %s643_s0, 4  ;;  %s49_s19 = int_to_ptr.vmem [resolvable:$true] %s48_s19  ;;  %s62_s20 = int_to_ptr.vmem [resolvable:$true] %s61_s20 }
   0xc   :  { %54 = dma.hbm_to_vmem [thread:$0]  %s47_s15, 1024, %s49_s19, [#allocation6], %s639_s9, %s639_s9, %s640_s10  }
   0xd   :  { %67 = dma.hbm_to_vmem [thread:$0]  %s60_s17, 1024, %s62_s20, [#allocation9], %s639_s9, %s639_s9, %s640_s10  }
   0xe   :  { %630 = dma.done.wait [#allocation3], 128  }
   0xf   :  { %631 = vsyncadd [#allocation3], 4294967168 }
  0x10   :  { %632 = dma.done.wait [#allocation6], 2048  }
  0x11   :  { %633 = vsyncadd [#allocation6], 4294965248 }
  0x12   :  { %634 = dma.done.wait [#allocation9], 1024  }
  0x13   :  { %635 = vsyncadd [#allocation9], 4294966272  ;;  %v481_v0 = vld [vmem:[#allocation5 + $0x38] sm:$0xff]  ;;  %v480_v1 = vld [vmem:[#allocation5 + $0x30] sm:$0xff]  ;;  %s644_s24 = smov [#allocation10]   ;;  %s645_s28 = smov 128  }
  0x14   :  { %166 = vmatpush.bf16.msra.mxu0 %v481_v0  ;;  %v489_v2 = vld [vmem:[#allocation7 + $0x38] sm:$0xff]  ;;  %v488_v3 = vld [vmem:[#allocation7 + $0x30] sm:$0xff]  ;;  %v479_v4 = vld [vmem:[#allocation5 + $0x28] sm:$0xff]  ;;  %s356_s25 = sshll.u32 %s644_s24, 4  ;;  %s646_s29 = smov 8   ;;  %s357_s25 = int_to_ptr.vmem [resolvable:$true] %s356_s25 }
  0x15   :  { %251 = vmatpush.bf16.msra.mxu1 %v489_v2  ;;  %v487_v5 = vld [vmem:[#allocation7 + $0x28] sm:$0xff]  ;;  %v478_v6 = vld [vmem:[#allocation5 + $0x20] sm:$0xff]  ;;  %v477_v8 = vld [vmem:[#allocation5 + $0x18] sm:$0xff] }
  0x16   :  { %v486_v7 = vld [vmem:[#allocation7 + $0x20] sm:$0xff]  ;;  %v476_v9 = vld [vmem:[#allocation5 + $0x10] sm:$0xff]  ;;  %v475_v10 = vld [vmem:[#allocation5 + $0x8] sm:$0xff] }
  0x17   :  { %v474_v11 = vld [vmem:[#allocation5] sm:$0xff]  ;;  %v473_v12 = vld [vmem:[#allocation2] sm:$0xff]  ;;  %v484_v14 = vld [vmem:[#allocation7 + $0x10] sm:$0xff] }
  0x18   :  { %167 = vmatpush.bf16.msra.mxu0 %v480_v1  ;;  %v485_v13 = vld [vmem:[#allocation7 + $0x18] sm:$0xff]  ;;  %v483_v15 = vld [vmem:[#allocation7 + $0x8] sm:$0xff]  ;;  %v482_v16 = vld [vmem:[#allocation7] sm:$0xff] }
  0x19   :  { %252 = vmatpush.bf16.msra.mxu1 %v488_v3  ;;  %v497_v17 = vld [vmem:[#allocation8 + $0x38] sm:$0xff]  ;;  %v496_v18 = vld [vmem:[#allocation8 + $0x30] sm:$0xff]  ;;  %v495_v19 = vld [vmem:[#allocation8 + $0x28] sm:$0xff] }
  0x1a   :  { %336 = vmatpush.bf16.msra.mxu2 %v497_v17  ;;  %v494_v20 = vld [vmem:[#allocation8 + $0x20] sm:$0xff]  ;;  %v507_v22 = vld [vmem:[%s715_s4] ss:$0 sm:$0xff]  ;;  %v492_v30 = vld [vmem:[#allocation8 + $0x10] sm:$0xff] }
  0x1b   :  { %v493_v29 = vld [vmem:[#allocation8 + $0x18] sm:$0xff]  ;;  %v491_v31 = vld [vmem:[#allocation8 + $0x8] sm:$0xff]  ;;  %v490_v32 = vld [vmem:[#allocation8] sm:$0xff] }
  0x1c   :  { %168 = vmatpush.bf16.msra.mxu0 %v479_v4  ;;  %v508_v34 = vld [vmem:[%s716_s5] ss:$0 sm:$0xff]  ;;  %s358_s5 = sshll.u32 %s718_s7, 4  ;;  %s359_s5 = int_to_ptr.hbm [resolvable:$true] %s358_s5 }
  0x1d   :  { %253 = vmatpush.bf16.msra.mxu1 %v487_v5  ;;  %v509_v41 = vld [vmem:[%s717_s6] ss:$0 sm:$0xff] }
  0x1e   :  { %337 = vmatpush.bf16.msra.mxu2 %v496_v18 }
  0x20   :  { %169 = vmatpush.bf16.msra.mxu0 %v478_v6 }
  0x21   :  { %254 = vmatpush.bf16.msra.mxu1 %v486_v7 }
  0x22   :  { %338 = vmatpush.bf16.msra.mxu2 %v495_v19 }
  0x24   :  { %170 = vmatpush.bf16.msra.mxu0 %v477_v8 }
  0x25   :  { %255 = vmatpush.bf16.msra.mxu1 %v485_v13 }
  0x26   :  { %339 = vmatpush.bf16.msra.mxu2 %v494_v20 }
  0x28   :  { %171 = vmatpush.bf16.msra.mxu0 %v476_v9 }
  0x29   :  { %256 = vmatpush.bf16.msra.mxu1 %v484_v14 }
  0x2a   :  { %340 = vmatpush.bf16.msra.mxu2 %v493_v29 }
  0x2c   :  { %172 = vmatpush.bf16.msra.mxu0 %v475_v10 }
  0x2d   :  { %257 = vmatpush.bf16.msra.mxu1 %v483_v15 }
  0x2e   :  { %341 = vmatpush.bf16.msra.mxu2 %v492_v30 }
  0x30   :  { %173 = vmatpush.bf16.msra.mxu0 %v474_v11 }
  0x31   :  { %258 = vmatpush.bf16.msra.mxu1 %v482_v16 }
  0x32   :  { %342 = vmatpush.bf16.msra.mxu2 %v491_v31 }
  0x33   :  { %174 = vmatmul.bf16.vlgmr.msra.gmra.mxu0 %v473_v12 }
  0x36   :  { %343 = vmatpush.bf16.msra.mxu2 %v490_v32 }
  0xb0   :  { %v175_v21 = vpop.f32.mrf.mxu0 }
  0xb1   :  { %v176_v23 = vadd.f32 %v507_v22, %v175_v21 }
  0xb3   :  { %v180_v26 = vmax.f32 %v176_v23, 0.0 }
  0xb8   :  { %v177_v24 = vpop.f32.mrf.mxu0 }
  0xb9   :  { %v178_v25 = vadd.f32 %v507_v22, %v177_v24 }
  0xbb   :  { %v181_v27 = vmax.f32 %v178_v25, 0.0 }
  0xbd   :  { %v182_v28 = vpack.c.bf16 %v181_v27, %v180_v26 }
  0xbf   :  { %259 = vmatmul.bf16.vlgmr.msra.gmra.mxu1 %v182_v28 }
 0x13c   :  { %v260_v33 = vpop.f32.mrf.mxu1 }
 0x13d   :  { %v261_v35 = vadd.f32 %v508_v34, %v260_v33 }
 0x13f   :  { %v265_v38 = vmax.f32 %v261_v35, 0.0 }
 0x144   :  { %v262_v36 = vpop.f32.mrf.mxu1 }
 0x145   :  { %v263_v37 = vadd.f32 %v508_v34, %v262_v36 }
 0x147   :  { %v266_v39 = vmax.f32 %v263_v37, 0.0 }
 0x149   :  { %v267_v40 = vpack.c.bf16 %v266_v39, %v265_v38 }
 0x14b   :  { %344 = vmatmul.bf16.vlgmr.msra.gmra.mxu2 %v267_v40 }
 0x1ce   :  { %v345_v42 = vpop.f32.mrf.mxu2 }
 0x1cf   :  { %v346_v43 = vadd.f32 %v509_v41, %v345_v42 }
 0x1d1   :  { %350 = vst [vmem:[#allocation10] sm:$0xff] %v346_v43 }
 0x1d6   :  { %v347_v44 = vpop.f32.mrf.mxu2 }
 0x1d7   :  { %v348_v45 = vadd.f32 %v509_v41, %v347_v44 }
 0x1d9   :  { %351 = vst [vmem:[#allocation10 + $0x8] sm:$0xff] %v348_v45 }
 0x1da   :  { %364 = dma.vmem_to_hbm [thread:$0]  %s357_s25, 256, %s359_s5, [#allocation4], %s645_s28, %s645_s28, %s646_s29  }
 0x1db   :  { %636 = dma.done.wait [#allocation4], 256  }
 0x1dc   :  { %637 = vsyncadd [#allocation4], 4294967040 }
 0x1dd   :  { %369 = vsyncpa [#allocation3], 1 }
 0x1de   :  { %370 = vsyncpa [#allocation6], 1 }
 0x1df   :  { %371 = vsyncpa [#allocation9], 1 }
 0x1e0   :  { %372 = vsyncpa [#allocation4], 1 }

// kernel: tpu_custom_call.1
= control target key start
LH: loop header
LB: loop body
LE: loop exit
PB: predicated region body
PF: predicated region fallthrough
CT: control target
= control target key end

     0   :  { %12 = vsyncpa [#allocation3], 0  ;;  %s711_s0 = inlined_call_operand.hbm [shape: bf16[16,128], index: 0, kind: input, shape index: {}]   ;;  %s712_s1 = inlined_call_operand.hbm [shape: bf16[128,128], index: 1, kind: input, shape index: {}]   ;;  %s713_s2 = inlined_call_operand.hbm [shape: bf16[128,128], index: 2, kind: input, shape index: {}]   ;;  %s714_s3 = inlined_call_operand.hbm [shape: bf16[128,128], index: 3, kind: input, shape index: {}]   ;;  %s715_s4 = inlined_call_operand.vmem [shape: f32[1,128], index: 4, kind: input, shape index: {}]   ;;  %s716_s5 = inlined_call_operand.vmem [shape: f32[1,128], index: 5, kind: input, shape index: {}]   ;;  %s717_s6 = inlined_call_operand.vmem [shape: f32[1,128], index: 6, kind: input, shape index: {}]   ;;  %s718_s7 = inlined_call_operand.hbm [shape: f32[16,128], index: 7, kind: output, shape index: {}]  }
   0x1   :  { %13 = vsyncpa [#allocation6], 0 }
   0x2   :  { %14 = vsyncpa [#allocation9], 0 }
   0x3   :  { %15 = vsyncpa [#allocation4], 0  ;;  %s33_s26 = sshll.u32 %s712_s1, 4  ;;  %s638_s27 = smov [#allocation5]   ;;  %s34_s26 = int_to_ptr.hbm [resolvable:$true] %s33_s26 }
   0x4   :  { %s35_s28 = sshll.u32 %s638_s27, 4  ;;  %s20_s8 = sshll.u32 %s711_s0, 4  ;;  %s36_s28 = int_to_ptr.vmem [resolvable:$true] %s35_s28  ;;  %s21_s8 = int_to_ptr.hbm [resolvable:$true] %s20_s8 }
   0x5   :  { %s639_s9 = smov 64   ;;  %s640_s10 = smov 4  }
   0x6   :  { %41 = dma.hbm_to_vmem [thread:$0]  %s34_s26, 1024, %s36_s28, [#allocation6], %s639_s9, %s639_s9, %s640_s10  }
   0x7   :  { %s641_s11 = smov [#allocation2]   ;;  %s46_s15 = sshll.u32 %s713_s2, 4  ;;  %s47_s15 = int_to_ptr.hbm [resolvable:$true] %s46_s15 }
   0x8   :  { %s22_s12 = sshll.u32 %s641_s11, 4  ;;  %s59_s17 = sshll.u32 %s714_s3, 4  ;;  %s23_s12 = int_to_ptr.vmem [resolvable:$true] %s22_s12  ;;  %s60_s17 = int_to_ptr.hbm [resolvable:$true] %s59_s17 }
   0x9   :  { %28 = dma.hbm_to_vmem [thread:$0]  %s21_s8, 128, %s23_s12, [#allocation3], %s639_s9, %s639_s9, %s640_s10  }
   0xa   :  { %s642_s18 = smov [#allocation7]   ;;  %s643_s0 = smov [#allocation8]  }
   0xb   :  { %s48_s19 = sshll.u32 %s642_s18, 4  ;;  %s61_s20 = sshll.u32 %s643_s0, 4  ;;  %s49_s19 = int_to_ptr.vmem [resolvable:$true] %s48_s19  ;;  %s62_s20 = int_to_ptr.vmem [resolvable:$true] %s61_s20 }
   0xc   :  { %54 = dma.hbm_to_vmem [thread:$0]  %s47_s15, 1024, %s49_s19, [#allocation6], %s639_s9, %s639_s9, %s640_s10  }
   0xd   :  { %67 = dma.hbm_to_vmem [thread:$0]  %s60_s17, 1024, %s62_s20, [#allocation9], %s639_s9, %s639_s9, %s640_s10  }
   0xe   :  { %630 = dma.done.wait [#allocation3], 128  }
   0xf   :  { %631 = vsyncadd [#allocation3], 4294967168 }
  0x10   :  { %632 = dma.done.wait [#allocation6], 2048  }
  0x11   :  { %633 = vsyncadd [#allocation6], 4294965248 }
  0x12   :  { %634 = dma.done.wait [#allocation9], 1024  }
  0x13   :  { %635 = vsyncadd [#allocation9], 4294966272  ;;  %v481_v0 = vld [vmem:[#allocation5 + $0x38] sm:$0xff]  ;;  %v480_v1 = vld [vmem:[#allocation5 + $0x30] sm:$0xff]  ;;  %s644_s24 = smov [#allocation10]   ;;  %s645_s28 = smov 128  }
  0x14   :  { %166 = vmatpush.bf16.msra.mxu0 %v481_v0  ;;  %v489_v2 = vld [vmem:[#allocation7 + $0x38] sm:$0xff]  ;;  %v488_v3 = vld [vmem:[#allocation7 + $0x30] sm:$0xff]  ;;  %v479_v4 = vld [vmem:[#allocation5 + $0x28] sm:$0xff]  ;;  %s356_s25 = sshll.u32 %s644_s24, 4  ;;  %s646_s29 = smov 8   ;;  %s357_s25 = int_to_ptr.vmem [resolvable:$true] %s356_s25 }
  0x15   :  { %251 = vmatpush.bf16.msra.mxu1 %v489_v2  ;;  %v487_v5 = vld [vmem:[#allocation7 + $0x28] sm:$0xff]  ;;  %v478_v6 = vld [vmem:[#allocation5 + $0x20] sm:$0xff]  ;;  %v477_v8 = vld [vmem:[#allocation5 + $0x18] sm:$0xff] }
  0x16   :  { %v486_v7 = vld [vmem:[#allocation7 + $0x20] sm:$0xff]  ;;  %v476_v9 = vld [vmem:[#allocation5 + $0x10] sm:$0xff]  ;;  %v475_v10 = vld [vmem:[#allocation5 + $0x8] sm:$0xff] }
  0x17   :  { %v474_v11 = vld [vmem:[#allocation5] sm:$0xff]  ;;  %v473_v12 = vld [vmem:[#allocation2] sm:$0xff]  ;;  %v484_v14 = vld [vmem:[#allocation7 + $0x10] sm:$0xff] }
  0x18   :  { %167 = vmatpush.bf16.msra.mxu0 %v480_v1  ;;  %v485_v13 = vld [vmem:[#allocation7 + $0x18] sm:$0xff]  ;;  %v483_v15 = vld [vmem:[#allocation7 + $0x8] sm:$0xff]  ;;  %v482_v16 = vld [vmem:[#allocation7] sm:$0xff] }
  0x19   :  { %252 = vmatpush.bf16.msra.mxu1 %v488_v3  ;;  %v497_v17 = vld [vmem:[#allocation8 + $0x38] sm:$0xff]  ;;  %v496_v18 = vld [vmem:[#allocation8 + $0x30] sm:$0xff]  ;;  %v495_v19 = vld [vmem:[#allocation8 + $0x28] sm:$0xff] }
  0x1a   :  { %336 = vmatpush.bf16.msra.mxu2 %v497_v17  ;;  %v494_v20 = vld [vmem:[#allocation8 + $0x20] sm:$0xff]  ;;  %v507_v22 = vld [vmem:[%s715_s4] ss:$0 sm:$0xff]  ;;  %v492_v30 = vld [vmem:[#allocation8 + $0x10] sm:$0xff] }
  0x1b   :  { %v493_v29 = vld [vmem:[#allocation8 + $0x18] sm:$0xff]  ;;  %v491_v31 = vld [vmem:[#allocation8 + $0x8] sm:$0xff]  ;;  %v490_v32 = vld [vmem:[#allocation8] sm:$0xff] }
  0x1c   :  { %168 = vmatpush.bf16.msra.mxu0 %v479_v4  ;;  %v508_v34 = vld [vmem:[%s716_s5] ss:$0 sm:$0xff]  ;;  %s358_s5 = sshll.u32 %s718_s7, 4  ;;  %s359_s5 = int_to_ptr.hbm [resolvable:$true] %s358_s5 }
  0x1d   :  { %253 = vmatpush.bf16.msra.mxu1 %v487_v5  ;;  %v509_v41 = vld [vmem:[%s717_s6] ss:$0 sm:$0xff] }
  0x1e   :  { %337 = vmatpush.bf16.msra.mxu2 %v496_v18 }
  0x20   :  { %169 = vmatpush.bf16.msra.mxu0 %v478_v6 }
  0x21   :  { %254 = vmatpush.bf16.msra.mxu1 %v486_v7 }
  0x22   :  { %338 = vmatpush.bf16.msra.mxu2 %v495_v19 }
  0x24   :  { %170 = vmatpush.bf16.msra.mxu0 %v477_v8 }
  0x25   :  { %255 = vmatpush.bf16.msra.mxu1 %v485_v13 }
  0x26   :  { %339 = vmatpush.bf16.msra.mxu2 %v494_v20 }
  0x28   :  { %171 = vmatpush.bf16.msra.mxu0 %v476_v9 }
  0x29   :  { %256 = vmatpush.bf16.msra.mxu1 %v484_v14 }
  0x2a   :  { %340 = vmatpush.bf16.msra.mxu2 %v493_v29 }
  0x2c   :  { %172 = vmatpush.bf16.msra.mxu0 %v475_v10 }
  0x2d   :  { %257 = vmatpush.bf16.msra.mxu1 %v483_v15 }
  0x2e   :  { %341 = vmatpush.bf16.msra.mxu2 %v492_v30 }
  0x30   :  { %173 = vmatpush.bf16.msra.mxu0 %v474_v11 }
  0x31   :  { %258 = vmatpush.bf16.msra.mxu1 %v482_v16 }
  0x32   :  { %342 = vmatpush.bf16.msra.mxu2 %v491_v31 }
  0x33   :  { %174 = vmatmul.bf16.vlgmr.msra.gmra.mxu0 %v473_v12 }
  0x36   :  { %343 = vmatpush.bf16.msra.mxu2 %v490_v32 }
  0xb0   :  { %v175_v21 = vpop.f32.mrf.mxu0 }
  0xb1   :  { %v176_v23 = vadd.f32 %v507_v22, %v175_v21 }
  0xb3   :  { %v180_v26 = vmax.f32 %v176_v23, 0.0 }
  0xb8   :  { %v177_v24 = vpop.f32.mrf.mxu0 }
  0xb9   :  { %v178_v25 = vadd.f32 %v507_v22, %v177_v24 }
  0xbb   :  { %v181_v27 = vmax.f32 %v178_v25, 0.0 }
  0xbd   :  { %v182_v28 = vpack.c.bf16 %v181_v27, %v180_v26 }
  0xbf   :  { %259 = vmatmul.bf16.vlgmr.msra.gmra.mxu1 %v182_v28 }
 0x13c   :  { %v260_v33 = vpop.f32.mrf.mxu1 }
 0x13d   :  { %v261_v35 = vadd.f32 %v508_v34, %v260_v33 }
 0x13f   :  { %v265_v38 = vmax.f32 %v261_v35, 0.0 }
 0x144   :  { %v262_v36 = vpop.f32.mrf.mxu1 }
 0x145   :  { %v263_v37 = vadd.f32 %v508_v34, %v262_v36 }
 0x147   :  { %v266_v39 = vmax.f32 %v263_v37, 0.0 }
 0x149   :  { %v267_v40 = vpack.c.bf16 %v266_v39, %v265_v38 }
 0x14b   :  { %344 = vmatmul.bf16.vlgmr.msra.gmra.mxu2 %v267_v40 }
 0x1ce   :  { %v345_v42 = vpop.f32.mrf.mxu2 }
 0x1cf   :  { %v346_v43 = vadd.f32 %v509_v41, %v345_v42 }
 0x1d1   :  { %350 = vst [vmem:[#allocation10] sm:$0xff] %v346_v43 }
 0x1d6   :  { %v347_v44 = vpop.f32.mrf.mxu2 }
 0x1d7   :  { %v348_v45 = vadd.f32 %v509_v41, %v347_v44 }
 0x1d9   :  { %351 = vst [vmem:[#allocation10 + $0x8] sm:$0xff] %v348_v45 }
 0x1da   :  { %364 = dma.vmem_to_hbm [thread:$0]  %s357_s25, 256, %s359_s5, [#allocation4], %s645_s28, %s645_s28, %s646_s29  }
 0x1db   :  { %636 = dma.done.wait [#allocation4], 256  }
 0x1dc   :  { %637 = vsyncadd [#allocation4], 4294967040 }
 0x1dd   :  { %369 = vsyncpa [#allocation3], 1 }
 0x1de   :  { %370 = vsyncpa [#allocation6], 1 }
 0x1df   :  { %371 = vsyncpa [#allocation9], 1 }
 0x1e0   :  { %372 = vsyncpa [#allocation4], 1 }

</bundles_post_ra>
